<compile_context>
chip_gen: v5e
topology: v5e:2x2
jax: 0.10.0
libtpu: 0.0.40
codegen_flags: <defaults>
</compile_context>

<pallas_src>
import functools

import jax
import jax.numpy as jnp
from jax.experimental import pallas as pl
from jax.experimental.pallas import tpu as pltpu


def _round_up(v, m):
    return (v + m - 1) // m * m


def _tile_plan(n):
    """Return (padded_n, tile_m, tile_k) for the node-row / source-node axes."""
    if n <= 512:
        n_p = _round_up(n, 128)
        return n_p, n_p, n_p            # single tile per axis
    n_p = _round_up(n, 512)
    return n_p, 256, 512                # fits comfortably in scoped VMEM on v5e/v6e/v7x


def _sage_kernel(*refs, apply_relu, project_agg, emit_proj):
    """One SAGEConv layer, tiled over (row tiles, source/K tiles).

    Accumulates agg = sum_k A[i,k] @ Xsrc[k] into an f32 VMEM scratch; on the last
    K step applies the (fused) projection, bias, optional ReLU, and optionally emits
    z = out @ W_next for the next layer's pre-projected aggregation.
    """
    if emit_proj:
        a_ref, xs_ref, xd_ref, w_ref, b_ref, wn_ref, out_ref, z_ref, acc_ref = refs
    else:
        a_ref, xs_ref, xd_ref, w_ref, b_ref, out_ref, acc_ref = refs
        wn_ref = z_ref = None

    k = pl.program_id(1)

    @pl.when(k == 0)
    def _init():
        acc_ref[...] = jnp.zeros_like(acc_ref)

    # Neighbor-mean aggregation tile: bf16 inputs, f32 accumulation on the MXU.
    acc_ref[...] += jnp.dot(a_ref[...], xs_ref[...],
                            preferred_element_type=jnp.float32)

    @pl.when(k == pl.num_programs(1) - 1)
    def _finalize():
        xd = xd_ref[...]
        if project_agg:
            # Single fused MXU pass: [agg | x] @ [W_l ; W_r]
            cat = jnp.concatenate([acc_ref[...].astype(xd.dtype), xd], axis=-1)
            out = jnp.dot(cat, w_ref[...],
                          preferred_element_type=jnp.float32) + b_ref[...]
        else:
            # Aggregation input was pre-projected; only the root term needs W (=W_r).
            out = acc_ref[...] + jnp.dot(
                xd, w_ref[...], preferred_element_type=jnp.float32) + b_ref[...]
        if apply_relu:
            out = jnp.maximum(out, 0.0)
        out_ref[...] = out.astype(out_ref.dtype)
        if emit_proj:
            z_ref[...] = jnp.dot(out.astype(wn_ref.dtype), wn_ref[...],
                                 preferred_element_type=jnp.float32
                                 ).astype(z_ref.dtype)


def sage_layer(adj, x_src, x_dst, w, b, *, apply_relu, project_agg,
               tile_m, tile_k, w_next=None, out_dtype=jnp.float32):
    """adj: (Np, Np) bf16 row-normalized; x_*: (Np, F*_p) bf16; w/b padded."""
    n_p = adj.shape[0]
    f_src = x_src.shape[1]
    f_dst = x_dst.shape[1]
    f_out = w.shape[1]
    emit_proj = w_next is not None

    grid = (n_p // tile_m, n_p // tile_k)

    in_specs = [
        pl.BlockSpec((tile_m, tile_k), lambda i, k: (i, k)),   # A tile
        pl.BlockSpec((tile_k, f_src), lambda i, k: (k, 0)),    # source features
        pl.BlockSpec((tile_m, f_dst), lambda i, k: (i, 0)),    # dest (root) features
        pl.BlockSpec(w.shape, lambda i, k: (0, 0)),            # (fused) projection W
        pl.BlockSpec((1, f_out), lambda i, k: (0, 0)),         # bias
    ]
    inputs = [adj, x_src, x_dst, w, b]
    out_shapes = [jax.ShapeDtypeStruct((n_p, f_out), out_dtype)]
    out_specs = [pl.BlockSpec((tile_m, f_out), lambda i, k: (i, 0))]
    if emit_proj:
        f_next = w_next.shape[1]
        in_specs.append(pl.BlockSpec(w_next.shape, lambda i, k: (0, 0)))
        inputs.append(w_next)
        out_shapes.append(jax.ShapeDtypeStruct((n_p, f_next), jnp.bfloat16))
        out_specs.append(pl.BlockSpec((tile_m, f_next), lambda i, k: (i, 0)))

    kernel = functools.partial(_sage_kernel, apply_relu=apply_relu,
                               project_agg=project_agg, emit_proj=emit_proj)

    return pl.pallas_call(
        kernel,
        out_shape=tuple(out_shapes) if emit_proj else out_shapes[0],
        grid_spec=pltpu.PrefetchScalarGridSpec(
            num_scalar_prefetch=0,
            grid=grid,
            in_specs=in_specs,
            out_specs=out_specs if emit_proj else out_specs[0],
            scratch_shapes=[pltpu.VMEM((tile_m, f_src), jnp.float32)],
        ),
        compiler_params=pltpu.CompilerParams(
            dimension_semantics=("parallel", "arbitrary"),
            vmem_limit_bytes=48 * 1024 * 1024,  # > 32MiB default, < v7x 64MiB physical
        ),
    )(*inputs)


def build_mean_adjacency(edge_index, num_nodes, padded_nodes):
    """Dense row-normalized adjacency, zero-padded, bf16: A[dst, src] = 1/in_deg(dst)."""
    src, dst = edge_index[0], edge_index[1]
    a = jnp.zeros((num_nodes, num_nodes), jnp.float32).at[dst, src].add(1.0)
    deg = a.sum(axis=1, keepdims=True)
    a = a / jnp.maximum(deg, 1.0)
    pad = padded_nodes - num_nodes
    a = jnp.pad(a, ((0, pad), (0, pad)))
    return a.astype(jnp.bfloat16)


def _pad2(w, rows, cols):
    return jnp.pad(w, ((0, rows - w.shape[0]), (0, cols - w.shape[1])))


def gnn_encoder_forward(params, x, edge_index):
    n, f_in = x.shape
    hidden = params["w_l1"].shape[1]
    f_out = params["w_l2"].shape[1]

    n_p, tile_m, tile_k = _tile_plan(n)
    f_in_p = _round_up(f_in, 128)
    hid_p = _round_up(hidden, 128)
    out_p = _round_up(f_out, 128)

    adj = build_mean_adjacency(edge_index, n, n_p)
    x_p = _pad2(x, n_p, f_in_p).astype(jnp.bfloat16)

    # Layer-1 params: fused [W_l ; W_r] + padded bias.  Layer-2's W_l is fed to the
    # layer-1 kernel so it can emit z = relu(h) @ W_l2 (cheaper association for L2).
    w_cat1 = jnp.concatenate(
        [_pad2(params["w_l1"], f_in_p, hid_p),
         _pad2(params["w_r1"], f_in_p, hid_p)], axis=0).astype(jnp.bfloat16)
    b1 = jnp.pad(params["b_l1"], (0, hid_p - hidden)).reshape(1, hid_p)
    w_l2 = _pad2(params["w_l2"], hid_p, out_p).astype(jnp.bfloat16)
    w_r2 = _pad2(params["w_r2"], hid_p, out_p).astype(jnp.bfloat16)
    b2 = jnp.pad(params["b_l2"], (0, out_p - f_out)).reshape(1, out_p)

    # Layer 1: h = relu(A@x @ W_l1 + x @ W_r1 + b1), also z = h @ W_l2 (both bf16).
    h_p, z_p = sage_layer(adj, x_p, x_p, w_cat1, b1,
                          apply_relu=True, project_agg=True,
                          tile_m=tile_m, tile_k=tile_k,
                          w_next=w_l2, out_dtype=jnp.bfloat16)

    # Layer 2: out = A @ z + h @ W_r2 + b2  ==  (A@h) @ W_l2 + h @ W_r2 + b2.
    out = sage_layer(adj, z_p, h_p, w_r2, b2,
                     apply_relu=False, project_agg=False,
                     tile_m=tile_m, tile_k=tile_k,
                     out_dtype=jnp.float32)
    return out[:n, :f_out]


def init_params(key, in_channels, hidden_channels, out_channels):
    ks = jax.random.split(key, 4)
    scale1 = 1.0 / jnp.sqrt(in_channels)
    scale2 = 1.0 / jnp.sqrt(hidden_channels)
    return {
        "w_l1": jax.random.normal(ks[0], (in_channels, hidden_channels), jnp.float32) * scale1,
        "w_r1": jax.random.normal(ks[1], (in_channels, hidden_channels), jnp.float32) * scale1,
        "b_l1": jnp.zeros((hidden_channels,), jnp.float32),
        "w_l2": jax.random.normal(ks[2], (hidden_channels, out_channels), jnp.float32) * scale2,
        "w_r2": jax.random.normal(ks[3], (hidden_channels, out_channels), jnp.float32) * scale2,
        "b_l2": jnp.zeros((out_channels,), jnp.float32),
    }


def _reference(params, x, edge_index):
    """Pure-JAX f32 reference with identical SAGEConv semantics."""
    n = x.shape[0]
    a = jnp.zeros((n, n), jnp.float32).at[edge_index[1], edge_index[0]].add(1.0)
    deg = a.sum(axis=1, keepdims=True)
    a = a / jnp.maximum(deg, 1.0)
    h = jnp.maximum(a @ x @ params["w_l1"] + x @ params["w_r1"] + params["b_l1"], 0.0)
    return a @ h @ params["w_l2"] + h @ params["w_r2"] + params["b_l2"]


if __name__ == "__main__":
    key = jax.random.PRNGKey(0)
    k_x, k_e, k_p = jax.random.split(key, 3)

    num_nodes = 16
    in_channels = 16
    hidden_channels = 32
    out_channels = 8
    num_edges = 40

    x = jax.random.normal(k_x, (num_nodes, in_channels), jnp.float32)
    edge_index = jax.random.randint(k_e, (2, num_edges), 0, num_nodes, jnp.int32)
    params = init_params(k_p, in_channels, hidden_channels, out_channels)

    out = jax.jit(gnn_encoder_forward)(params, x, edge_index)
    jax.block_until_ready(out)
    assert out.shape == (num_nodes, out_channels)

    # Loose tolerance: kernel runs the graph matmuls in bf16 (f32 accumulation).
    ref = _reference(params, x, edge_index)
    tol = 0.2 + 0.05 * float(jnp.max(jnp.abs(ref)))
    assert float(jnp.max(jnp.abs(out - ref))) < tol

    print("KERNEL_OK")
</pallas_src>

<mosaic_0001>
module attributes {stable_mosaic.version = 11 : i64} {
  func.func @_sage_kernel(%arg0: i32, %arg1: i32, %arg2: memref<128x128xbf16, #tpu.memory_space<vmem>>, %arg3: memref<128x128xbf16, #tpu.memory_space<vmem>>, %arg4: memref<128x128xbf16, #tpu.memory_space<vmem>>, %arg5: memref<128x128xbf16, #tpu.memory_space<vmem>>, %arg6: memref<1x128xf32, #tpu.memory_space<vmem>>, %arg7: memref<128x128xf32, #tpu.memory_space<vmem>>, %arg8: memref<128x128xf32, #tpu.memory_space<vmem>>) attributes {dimension_semantics = [#tpu.dimension_semantics<parallel>, #tpu.dimension_semantics<arbitrary>], iteration_bounds = array<i64: 1, 1>, scalar_prefetch = 0 : i64, scratch_operands = 1 : i64, tpu.core_type = #tpu.core_type<tc>, window_params = [{transform_indices = @transform_0, window_bounds = array<i64: 128, 128>}, {transform_indices = @transform_1, window_bounds = array<i64: 128, 128>}, {transform_indices = @transform_2, window_bounds = array<i64: 128, 128>}, {pipeline_mode = #tpu.pipeline_mode<synchronous>, transform_indices = @transform_3, window_bounds = array<i64: 128, 128>}, {pipeline_mode = #tpu.pipeline_mode<synchronous>, transform_indices = @transform_4, window_bounds = array<i64: 1, 128>}, {transform_indices = @transform_5, window_bounds = array<i64: 128, 128>}]} {
    %c0_i32 = arith.constant 0 : i32
    %0 = arith.cmpi eq, %arg1, %c0_i32 : i32
    %1 = arith.extui %0 : i1 to i32
    %c0_i32_0 = arith.constant 0 : i32
    %2 = arith.cmpi ne, %1, %c0_i32_0 : i32
    scf.if %2 {
      %cst_10 = arith.constant 0.000000e+00 : f32
      %12 = vector.broadcast %cst_10 : f32 to vector<128x128xf32>
      %c0_11 = arith.constant 0 : index
      %c0_12 = arith.constant 0 : index
      %13 = vector.load %arg8[%c0_11, %c0_12] : memref<128x128xf32, #tpu.memory_space<vmem>>, vector<128x128xf32>
      tpu.vector_store %arg8[%c0_11, %c0_12], %12 {strides = array<i32>} : memref<128x128xf32, #tpu.memory_space<vmem>>, vector<128x128xf32>,
    } else {
    }
    %c0 = arith.constant 0 : index
    %c0_1 = arith.constant 0 : index
    %3 = vector.load %arg8[%c0, %c0_1] : memref<128x128xf32, #tpu.memory_space<vmem>>, vector<128x128xf32>
    %c0_2 = arith.constant 0 : index
    %c0_3 = arith.constant 0 : index
    %4 = vector.load %arg2[%c0_2, %c0_3] : memref<128x128xbf16, #tpu.memory_space<vmem>>, vector<128x128xbf16>
    %c0_4 = arith.constant 0 : index
    %c0_5 = arith.constant 0 : index
    %5 = vector.load %arg3[%c0_4, %c0_5] : memref<128x128xbf16, #tpu.memory_space<vmem>>, vector<128x128xbf16>
    %cst = arith.constant dense<0.000000e+00> : vector<128x128xf32>
    %6 = tpu.matmul %4, %5, %cst {dimension_numbers = #tpu.dot_dimension_numbers<[1], [0], [0], [1], [0, 0, 1, 1], [], []>} : vector<128x128xbf16>, vector<128x128xbf16>, vector<128x128xf32> -> vector<128x128xf32>
    %7 = arith.addf %3, %6 : vector<128x128xf32>
    %c0_6 = arith.constant 0 : index
    %c0_7 = arith.constant 0 : index
    %8 = vector.load %arg8[%c0_6, %c0_7] : memref<128x128xf32, #tpu.memory_space<vmem>>, vector<128x128xf32>
    tpu.vector_store %arg8[%c0_6, %c0_7], %7 {strides = array<i32>} : memref<128x128xf32, #tpu.memory_space<vmem>>, vector<128x128xf32>,
    %c0_i32_8 = arith.constant 0 : i32
    %9 = arith.cmpi eq, %arg1, %c0_i32_8 : i32
    %10 = arith.extui %9 : i1 to i32
    %c0_i32_9 = arith.constant 0 : i32
    %11 = arith.cmpi ne, %10, %c0_i32_9 : i32
    scf.if %11 {
      %c0_10 = arith.constant 0 : index
      %c0_11 = arith.constant 0 : index
      %12 = vector.load %arg4[%c0_10, %c0_11] : memref<128x128xbf16, #tpu.memory_space<vmem>>, vector<128x128xbf16>
      %c0_12 = arith.constant 0 : index
      %c0_13 = arith.constant 0 : index
      %13 = vector.load %arg8[%c0_12, %c0_13] : memref<128x128xf32, #tpu.memory_space<vmem>>, vector<128x128xf32>
      %c0_14 = arith.constant 0 : index
      %c0_15 = arith.constant 0 : index
      %14 = vector.load %arg5[%c0_14, %c0_15] : memref<128x128xbf16, #tpu.memory_space<vmem>>, vector<128x128xbf16>
      %cst_16 = arith.constant dense<0.000000e+00> : vector<128x128xf32>
      %15 = tpu.matmul %12, %14, %cst_16 {dimension_numbers = #tpu.dot_dimension_numbers<[1], [0], [0], [1], [0, 0, 1, 1], [], []>} : vector<128x128xbf16>, vector<128x128xbf16>, vector<128x128xf32> -> vector<128x128xf32>
      %16 = arith.addf %13, %15 : vector<128x128xf32>
      %c0_17 = arith.constant 0 : index
      %c0_18 = arith.constant 0 : index
      %17 = vector.load %arg6[%c0_17, %c0_18] : memref<1x128xf32, #tpu.memory_space<vmem>>, vector<1x128xf32>
      %18 = vector.broadcast %17 : vector<1x128xf32> to vector<128x128xf32>
      %19 = arith.addf %16, %18 : vector<128x128xf32>
      %c0_19 = arith.constant 0 : index
      %c0_20 = arith.constant 0 : index
      %20 = vector.load %arg7[%c0_19, %c0_20] : memref<128x128xf32, #tpu.memory_space<vmem>>, vector<128x128xf32>
      tpu.vector_store %arg7[%c0_19, %c0_20], %19 {strides = array<i32>} : memref<128x128xf32, #tpu.memory_space<vmem>>, vector<128x128xf32>,
    } else {
    }
    return
  }
  func.func @transform_0(%arg0: i32, %arg1: i32) -> (i32, i32) {
    %c0_i32 = arith.constant 0 : i32
    return %arg0, %arg1 : i32, i32
  }
  func.func @transform_1(%arg0: i32, %arg1: i32) -> (i32, i32) {
    %c0_i32 = arith.constant 0 : i32
    %c0_i32_0 = arith.constant 0 : i32
    return %arg1, %c0_i32 : i32, i32
  }
  func.func @transform_2(%arg0: i32, %arg1: i32) -> (i32, i32) {
    %c0_i32 = arith.constant 0 : i32
    %c0_i32_0 = arith.constant 0 : i32
    return %arg0, %c0_i32 : i32, i32
  }
  func.func @transform_3(%arg0: i32, %arg1: i32) -> (i32, i32) {
    %c0_i32 = arith.constant 0 : i32
    %c0_i32_0 = arith.constant 0 : i32
    %c0_i32_1 = arith.constant 0 : i32
    return %c0_i32, %c0_i32_0 : i32, i32
  }
  func.func @transform_4(%arg0: i32, %arg1: i32) -> (i32, i32) {
    %c0_i32 = arith.constant 0 : i32
    %c0_i32_0 = arith.constant 0 : i32
    %c0_i32_1 = arith.constant 0 : i32
    return %c0_i32, %c0_i32_0 : i32, i32
  }
  func.func @transform_5(%arg0: i32, %arg1: i32) -> (i32, i32) {
    %c0_i32 = arith.constant 0 : i32
    %c0_i32_0 = arith.constant 0 : i32
    return %arg0, %c0_i32 : i32, i32
  }
}

module attributes {stable_mosaic.version = 11 : i64} {
  func.func @_sage_kernel(%arg0: i32, %arg1: i32, %arg2: memref<128x128xbf16, #tpu.memory_space<vmem>>, %arg3: memref<128x128xbf16, #tpu.memory_space<vmem>>, %arg4: memref<128x128xbf16, #tpu.memory_space<vmem>>, %arg5: memref<256x128xbf16, #tpu.memory_space<vmem>>, %arg6: memref<1x128xf32, #tpu.memory_space<vmem>>, %arg7: memref<128x128xbf16, #tpu.memory_space<vmem>>, %arg8: memref<128x128xbf16, #tpu.memory_space<vmem>>, %arg9: memref<128x128xbf16, #tpu.memory_space<vmem>>, %arg10: memref<128x128xf32, #tpu.memory_space<vmem>>) attributes {dimension_semantics = [#tpu.dimension_semantics<parallel>, #tpu.dimension_semantics<arbitrary>], iteration_bounds = array<i64: 1, 1>, scalar_prefetch = 0 : i64, scratch_operands = 1 : i64, tpu.core_type = #tpu.core_type<tc>, window_params = [{transform_indices = @transform_0, window_bounds = array<i64: 128, 128>}, {transform_indices = @transform_1, window_bounds = array<i64: 128, 128>}, {transform_indices = @transform_2, window_bounds = array<i64: 128, 128>}, {pipeline_mode = #tpu.pipeline_mode<synchronous>, transform_indices = @transform_3, window_bounds = array<i64: 256, 128>}, {pipeline_mode = #tpu.pipeline_mode<synchronous>, transform_indices = @transform_4, window_bounds = array<i64: 1, 128>}, {pipeline_mode = #tpu.pipeline_mode<synchronous>, transform_indices = @transform_5, window_bounds = array<i64: 128, 128>}, {transform_indices = @transform_6, window_bounds = array<i64: 128, 128>}, {transform_indices = @transform_7, window_bounds = array<i64: 128, 128>}]} {
    %c0_i32 = arith.constant 0 : i32
    %0 = arith.cmpi eq, %arg1, %c0_i32 : i32
    %1 = arith.extui %0 : i1 to i32
    %c0_i32_0 = arith.constant 0 : i32
    %2 = arith.cmpi ne, %1, %c0_i32_0 : i32
    scf.if %2 {
      %cst_10 = arith.constant 0.000000e+00 : f32
      %12 = vector.broadcast %cst_10 : f32 to vector<128x128xf32>
      %c0_11 = arith.constant 0 : index
      %c0_12 = arith.constant 0 : index
      %13 = vector.load %arg10[%c0_11, %c0_12] : memref<128x128xf32, #tpu.memory_space<vmem>>, vector<128x128xf32>
      tpu.vector_store %arg10[%c0_11, %c0_12], %12 {strides = array<i32>} : memref<128x128xf32, #tpu.memory_space<vmem>>, vector<128x128xf32>,
    } else {
    }
    %c0 = arith.constant 0 : index
    %c0_1 = arith.constant 0 : index
    %3 = vector.load %arg10[%c0, %c0_1] : memref<128x128xf32, #tpu.memory_space<vmem>>, vector<128x128xf32>
    %c0_2 = arith.constant 0 : index
    %c0_3 = arith.constant 0 : index
    %4 = vector.load %arg2[%c0_2, %c0_3] : memref<128x128xbf16, #tpu.memory_space<vmem>>, vector<128x128xbf16>
    %c0_4 = arith.constant 0 : index
    %c0_5 = arith.constant 0 : index
    %5 = vector.load %arg3[%c0_4, %c0_5] : memref<128x128xbf16, #tpu.memory_space<vmem>>, vector<128x128xbf16>
    %cst = arith.constant dense<0.000000e+00> : vector<128x128xf32>
    %6 = tpu.matmul %4, %5, %cst {dimension_numbers = #tpu.dot_dimension_numbers<[1], [0], [0], [1], [0, 0, 1, 1], [], []>} : vector<128x128xbf16>, vector<128x128xbf16>, vector<128x128xf32> -> vector<128x128xf32>
    %7 = arith.addf %3, %6 : vector<128x128xf32>
    %c0_6 = arith.constant 0 : index
    %c0_7 = arith.constant 0 : index
    %8 = vector.load %arg10[%c0_6, %c0_7] : memref<128x128xf32, #tpu.memory_space<vmem>>, vector<128x128xf32>
    tpu.vector_store %arg10[%c0_6, %c0_7], %7 {strides = array<i32>} : memref<128x128xf32, #tpu.memory_space<vmem>>, vector<128x128xf32>,
    %c0_i32_8 = arith.constant 0 : i32
    %9 = arith.cmpi eq, %arg1, %c0_i32_8 : i32
    %10 = arith.extui %9 : i1 to i32
    %c0_i32_9 = arith.constant 0 : i32
    %11 = arith.cmpi ne, %10, %c0_i32_9 : i32
    scf.if %11 {
      %c0_10 = arith.constant 0 : index
      %c0_11 = arith.constant 0 : index
      %12 = vector.load %arg4[%c0_10, %c0_11] : memref<128x128xbf16, #tpu.memory_space<vmem>>, vector<128x128xbf16>
      %c0_12 = arith.constant 0 : index
      %c0_13 = arith.constant 0 : index
      %13 = vector.load %arg10[%c0_12, %c0_13] : memref<128x128xf32, #tpu.memory_space<vmem>>, vector<128x128xf32>
      %14 = arith.truncf %13 : vector<128x128xf32> to vector<128x128xbf16>
      %15 = tpu.concatenate %14, %12 in 1 : vector<128x128xbf16>, vector<128x128xbf16> -> vector<128x256xbf16>
      %c0_14 = arith.constant 0 : index
      %c0_15 = arith.constant 0 : index
      %16 = vector.load %arg5[%c0_14, %c0_15] : memref<256x128xbf16, #tpu.memory_space<vmem>>, vector<256x128xbf16>
      %cst_16 = arith.constant dense<0.000000e+00> : vector<128x128xf32>
      %17 = tpu.matmul %15, %16, %cst_16 {dimension_numbers = #tpu.dot_dimension_numbers<[1], [0], [0], [1], [0, 0, 1, 1], [], []>} : vector<128x256xbf16>, vector<256x128xbf16>, vector<128x128xf32> -> vector<128x128xf32>
      %c0_17 = arith.constant 0 : index
      %c0_18 = arith.constant 0 : index
      %18 = vector.load %arg6[%c0_17, %c0_18] : memref<1x128xf32, #tpu.memory_space<vmem>>, vector<1x128xf32>
      %19 = vector.broadcast %18 : vector<1x128xf32> to vector<128x128xf32>
      %20 = arith.addf %17, %19 : vector<128x128xf32>
      %cst_19 = arith.constant 0.000000e+00 : f32
      %21 = vector.broadcast %cst_19 : f32 to vector<128x128xf32>
      %22 = arith.maximumf %20, %21 : vector<128x128xf32>
      %23 = arith.truncf %22 : vector<128x128xf32> to vector<128x128xbf16>
      %c0_20 = arith.constant 0 : index
      %c0_21 = arith.constant 0 : index
      %24 = vector.load %arg8[%c0_20, %c0_21] : memref<128x128xbf16, #tpu.memory_space<vmem>>, vector<128x128xbf16>
      tpu.vector_store %arg8[%c0_20, %c0_21], %23 {strides = array<i32>} : memref<128x128xbf16, #tpu.memory_space<vmem>>, vector<128x128xbf16>,
      %25 = arith.truncf %22 : vector<128x128xf32> to vector<128x128xbf16>
      %c0_22 = arith.constant 0 : index
      %c0_23 = arith.constant 0 : index
      %26 = vector.load %arg7[%c0_22, %c0_23] : memref<128x128xbf16, #tpu.memory_space<vmem>>, vector<128x128xbf16>
      %cst_24 = arith.constant dense<0.000000e+00> : vector<128x128xf32>
      %27 = tpu.matmul %25, %26, %cst_24 {dimension_numbers = #tpu.dot_dimension_numbers<[1], [0], [0], [1], [0, 0, 1, 1], [], []>} : vector<128x128xbf16>, vector<128x128xbf16>, vector<128x128xf32> -> vector<128x128xf32>
      %28 = arith.truncf %27 : vector<128x128xf32> to vector<128x128xbf16>
      %c0_25 = arith.constant 0 : index
      %c0_26 = arith.constant 0 : index
      %29 = vector.load %arg9[%c0_25, %c0_26] : memref<128x128xbf16, #tpu.memory_space<vmem>>, vector<128x128xbf16>
      tpu.vector_store %arg9[%c0_25, %c0_26], %28 {strides = array<i32>} : memref<128x128xbf16, #tpu.memory_space<vmem>>, vector<128x128xbf16>,
    } else {
    }
    return
  }
  func.func @transform_0(%arg0: i32, %arg1: i32) -> (i32, i32) {
    %c0_i32 = arith.constant 0 : i32
    return %arg0, %arg1 : i32, i32
  }
  func.func @transform_1(%arg0: i32, %arg1: i32) -> (i32, i32) {
    %c0_i32 = arith.constant 0 : i32
    %c0_i32_0 = arith.constant 0 : i32
    return %arg1, %c0_i32 : i32, i32
  }
  func.func @transform_2(%arg0: i32, %arg1: i32) -> (i32, i32) {
    %c0_i32 = arith.constant 0 : i32
    %c0_i32_0 = arith.constant 0 : i32
    return %arg0, %c0_i32 : i32, i32
  }
  func.func @transform_3(%arg0: i32, %arg1: i32) -> (i32, i32) {
    %c0_i32 = arith.constant 0 : i32
    %c0_i32_0 = arith.constant 0 : i32
    %c0_i32_1 = arith.constant 0 : i32
    return %c0_i32, %c0_i32_0 : i32, i32
  }
  func.func @transform_4(%arg0: i32, %arg1: i32) -> (i32, i32) {
    %c0_i32 = arith.constant 0 : i32
    %c0_i32_0 = arith.constant 0 : i32
    %c0_i32_1 = arith.constant 0 : i32
    return %c0_i32, %c0_i32_0 : i32, i32
  }
  func.func @transform_5(%arg0: i32, %arg1: i32) -> (i32, i32) {
    %c0_i32 = arith.constant 0 : i32
    %c0_i32_0 = arith.constant 0 : i32
    %c0_i32_1 = arith.constant 0 : i32
    return %c0_i32, %c0_i32_0 : i32, i32
  }
  func.func @transform_6(%arg0: i32, %arg1: i32) -> (i32, i32) {
    %c0_i32 = arith.constant 0 : i32
    %c0_i32_0 = arith.constant 0 : i32
    return %arg0, %c0_i32 : i32, i32
  }
  func.func @transform_7(%arg0: i32, %arg1: i32) -> (i32, i32) {
    %c0_i32 = arith.constant 0 : i32
    %c0_i32_0 = arith.constant 0 : i32
    return %arg0, %c0_i32 : i32, i32
  }
}

</mosaic_0001>

<bundles_post_ra>
// kernel: gnn_encoder_forward.3
= control target key start
LH: loop header
LB: loop body
LE: loop exit
PB: predicated region body
PF: predicated region fallthrough
CT: control target
= control target key end

     0   :  { %s889_s1 = inlined_call_operand.vmem [shape: bf16[128,128], index: 1, kind: input, shape index: {}]   ;;  %s890_s3 = inlined_call_operand.vmem [shape: bf16[128,128], index: 3, kind: input, shape index: {}]   ;;  %s891_s0 = inlined_call_operand.vmem [shape: bf16[128,128], index: 0, kind: input, shape index: {}]   ;;  %s892_s2 = inlined_call_operand.vmem [shape: bf16[128,128], index: 2, kind: input, shape index: {}]   ;;  %s893_s4 = inlined_call_operand.vmem [shape: f32[1,128], index: 4, kind: input, shape index: {}]   ;;  %s894_s5 = inlined_call_operand.vmem [shape: f32[128,128], index: 5, kind: output, shape index: {}]  }
   0x1   :  { %v660_v0 = vld [vmem:[%s889_s1 + $0x38] sm:$0xff]  ;;  %v659_v2 = vld [vmem:[%s889_s1 + $0x30] sm:$0xff]  ;;  %v658_v4 = vld [vmem:[%s889_s1 + $0x28] sm:$0xff] }
   0x2   :  { %v676_v1 = vld [vmem:[%s890_s3 + $0x38] sm:$0xff]  ;;  %184 = vmatpush.bf16.msra.mxu0 %v660_v0  ;;  %677 = vmatpush.bf16.msra.mxu2 %v660_v0  ;;  %v675_v3 = vld [vmem:[%s890_s3 + $0x30] sm:$0xff]  ;;  %v674_v5 = vld [vmem:[%s890_s3 + $0x28] sm:$0xff] }
   0x3   :  { %412 = vmatpush.bf16.msra.mxu1 %v676_v1  ;;  %685 = vmatpush.bf16.msra.mxu3 %v676_v1  ;;  %v657_v6 = vld [vmem:[%s889_s1 + $0x20] sm:$0xff]  ;;  %v656_v8 = vld [vmem:[%s889_s1 + $0x18] sm:$0xff]  ;;  %v655_v10 = vld [vmem:[%s889_s1 + $0x10] sm:$0xff] }
   0x4   :  { %v673_v7 = vld [vmem:[%s890_s3 + $0x20] sm:$0xff]  ;;  %v672_v9 = vld [vmem:[%s890_s3 + $0x18] sm:$0xff]  ;;  %v671_v11 = vld [vmem:[%s890_s3 + $0x10] sm:$0xff] }
   0x5   :  { %v654_v12 = vld [vmem:[%s889_s1 + $0x8] sm:$0xff]  ;;  %v653_v14 = vld [vmem:[%s889_s1] sm:$0xff]  ;;  %v647_v24 = vld [vmem:[%s891_s0 + $0x10] sm:$0xff] }
   0x6   :  { %185 = vmatpush.bf16.msra.mxu0 %v659_v2  ;;  %678 = vmatpush.bf16.msra.mxu2 %v659_v2  ;;  %v670_v13 = vld [vmem:[%s890_s3 + $0x8] sm:$0xff]  ;;  %v669_v15 = vld [vmem:[%s890_s3] sm:$0xff]  ;;  %v651_v25 = vld [vmem:[%s891_s0 + $0x30] sm:$0xff] }
   0x7   :  { %413 = vmatpush.bf16.msra.mxu1 %v675_v3  ;;  %686 = vmatpush.bf16.msra.mxu3 %v675_v3  ;;  %v645_v16 = vld [vmem:[%s891_s0] sm:$0xff]  ;;  %v646_v20 = vld [vmem:[%s891_s0 + $0x8] sm:$0xff]  ;;  %v663_v26 = vld [vmem:[%s892_s2 + $0x10] sm:$0xff] }
   0x8   :  { %v649_v17 = vld [vmem:[%s891_s0 + $0x20] sm:$0xff]  ;;  %v650_v21 = vld [vmem:[%s891_s0 + $0x28] sm:$0xff]  ;;  %v667_v27 = vld [vmem:[%s892_s2 + $0x30] sm:$0xff] }
   0x9   :  { %v661_v18 = vld [vmem:[%s892_s2] sm:$0xff]  ;;  %v662_v22 = vld [vmem:[%s892_s2 + $0x8] sm:$0xff]  ;;  %v648_v28 = vld [vmem:[%s891_s0 + $0x18] sm:$0xff] }
   0xa   :  { %186 = vmatpush.bf16.msra.mxu0 %v658_v4  ;;  %679 = vmatpush.bf16.msra.mxu2 %v658_v4  ;;  %v665_v19 = vld [vmem:[%s892_s2 + $0x20] sm:$0xff]  ;;  %v666_v23 = vld [vmem:[%s892_s2 + $0x28] sm:$0xff]  ;;  %v652_v29 = vld [vmem:[%s891_s0 + $0x38] sm:$0xff] }
   0xb   :  { %414 = vmatpush.bf16.msra.mxu1 %v674_v5  ;;  %687 = vmatpush.bf16.msra.mxu3 %v674_v5  ;;  %v664_v30 = vld [vmem:[%s892_s2 + $0x18] sm:$0xff]  ;;  %v823_v33 = vld [vmem:[%s893_s4] ss:$0 sm:$0xff] }
   0xc   :  { %v668_v31 = vld [vmem:[%s892_s2 + $0x38] sm:$0xff] }
   0xe   :  { %187 = vmatpush.bf16.msra.mxu0 %v657_v6  ;;  %680 = vmatpush.bf16.msra.mxu2 %v657_v6 }
   0xf   :  { %415 = vmatpush.bf16.msra.mxu1 %v673_v7  ;;  %688 = vmatpush.bf16.msra.mxu3 %v673_v7 }
  0x12   :  { %188 = vmatpush.bf16.msra.mxu0 %v656_v8  ;;  %681 = vmatpush.bf16.msra.mxu2 %v656_v8 }
  0x13   :  { %416 = vmatpush.bf16.msra.mxu1 %v672_v9  ;;  %689 = vmatpush.bf16.msra.mxu3 %v672_v9 }
  0x16   :  { %189 = vmatpush.bf16.msra.mxu0 %v655_v10  ;;  %682 = vmatpush.bf16.msra.mxu2 %v655_v10 }
  0x17   :  { %417 = vmatpush.bf16.msra.mxu1 %v671_v11  ;;  %690 = vmatpush.bf16.msra.mxu3 %v671_v11 }
  0x1a   :  { %190 = vmatpush.bf16.msra.mxu0 %v654_v12  ;;  %683 = vmatpush.bf16.msra.mxu2 %v654_v12 }
  0x1b   :  { %418 = vmatpush.bf16.msra.mxu1 %v670_v13  ;;  %691 = vmatpush.bf16.msra.mxu3 %v670_v13 }
  0x1e   :  { %191 = vmatpush.bf16.msra.mxu0 %v653_v14  ;;  %684 = vmatpush.bf16.msra.mxu2 %v653_v14 }
  0x1f   :  { %419 = vmatpush.bf16.msra.mxu1 %v669_v15  ;;  %692 = vmatpush.bf16.msra.mxu3 %v669_v15 }
  0x21   :  { %192 = vmatmul.bf16.vlgmr.msra.gmra.mxu0 %v645_v16  ;;  %212 = vmatmul.bf16.vlgmr.msra.gmra.mxu2 %v649_v17 }
  0x22   :  { %420 = vmatmul.bf16.vlgmr.msra.gmra.mxu1 %v661_v18  ;;  %440 = vmatmul.bf16.vlgmr.msra.gmra.mxu3 %v665_v19 }
  0x31   :  { %197 = vmatmul.bf16.gmra.mxu0 %v646_v20  ;;  %217 = vmatmul.bf16.gmra.mxu2 %v650_v21 }
  0x32   :  { %425 = vmatmul.bf16.gmra.mxu1 %v662_v22  ;;  %445 = vmatmul.bf16.gmra.mxu3 %v666_v23 }
  0x41   :  { %202 = vmatmul.bf16.gmra.mxu0 %v647_v24  ;;  %222 = vmatmul.bf16.gmra.mxu2 %v651_v25 }
  0x42   :  { %430 = vmatmul.bf16.gmra.mxu1 %v663_v26  ;;  %450 = vmatmul.bf16.gmra.mxu3 %v667_v27 }
  0x51   :  { %207 = vmatmul.bf16.gmra.mxu0 %v648_v28  ;;  %227 = vmatmul.bf16.gmra.mxu2 %v652_v29 }
  0x52   :  { %435 = vmatmul.bf16.gmra.mxu1 %v664_v30  ;;  %455 = vmatmul.bf16.gmra.mxu3 %v668_v31 }
  0x9e   :  { %v193_v32 = vpop.f32.mrf.mxu0 }
  0x9f   :  { %v421_v34 = vpop.f32.mrf.mxu1 }
  0xa0   :  { %v461_v35 = vadd.f32 %v421_v34, %v193_v32 }
  0xa2   :  { %v481_v36 = vadd.f32 %v823_v33, %v461_v35 }
  0xa4   :  { %497 = vst [vmem:[%s894_s5] sm:$0xff] %v481_v36  ;;  %v213_v37 = vpop.f32.mrf.mxu2 }
  0xa5   :  { %v441_v38 = vpop.f32.mrf.mxu3 }
  0xa6   :  { %v469_v39 = vadd.f32 %v441_v38, %v213_v37  ;;  %v195_v40 = vpop.f32.mrf.mxu0 }
  0xa7   :  { %v423_v41 = vpop.f32.mrf.mxu1 }
  0xa8   :  { %v489_v42 = vadd.f32 %v823_v33, %v469_v39  ;;  %v462_v43 = vadd.f32 %v423_v41, %v195_v40 }
  0xaa   :  { %505 = vst [vmem:[%s894_s5 + $0x40] sm:$0xff] %v489_v42  ;;  %v482_v44 = vadd.f32 %v823_v33, %v462_v43 }
  0xac   :  { %498 = vst [vmem:[%s894_s5 + $0x8] sm:$0xff] %v482_v44  ;;  %v215_v45 = vpop.f32.mrf.mxu2 }
  0xad   :  { %v443_v46 = vpop.f32.mrf.mxu3 }
  0xae   :  { %v470_v47 = vadd.f32 %v443_v46, %v215_v45  ;;  %v198_v48 = vpop.f32.mrf.mxu0 }
  0xaf   :  { %v426_v49 = vpop.f32.mrf.mxu1 }
  0xb0   :  { %v490_v50 = vadd.f32 %v823_v33, %v470_v47  ;;  %v463_v51 = vadd.f32 %v426_v49, %v198_v48 }
  0xb2   :  { %506 = vst [vmem:[%s894_s5 + $0x48] sm:$0xff] %v490_v50  ;;  %v483_v52 = vadd.f32 %v823_v33, %v463_v51 }
  0xb4   :  { %499 = vst [vmem:[%s894_s5 + $0x10] sm:$0xff] %v483_v52  ;;  %v218_v53 = vpop.f32.mrf.mxu2 }
  0xb5   :  { %v446_v54 = vpop.f32.mrf.mxu3 }
  0xb6   :  { %v471_v55 = vadd.f32 %v446_v54, %v218_v53  ;;  %v200_v56 = vpop.f32.mrf.mxu0 }
  0xb7   :  { %v428_v57 = vpop.f32.mrf.mxu1 }
  0xb8   :  { %v491_v58 = vadd.f32 %v823_v33, %v471_v55  ;;  %v464_v59 = vadd.f32 %v428_v57, %v200_v56 }
  0xba   :  { %507 = vst [vmem:[%s894_s5 + $0x50] sm:$0xff] %v491_v58  ;;  %v484_v60 = vadd.f32 %v823_v33, %v464_v59 }
  0xbc   :  { %500 = vst [vmem:[%s894_s5 + $0x18] sm:$0xff] %v484_v60  ;;  %v220_v61 = vpop.f32.mrf.mxu2 }
  0xbd   :  { %v448_v62 = vpop.f32.mrf.mxu3 }
  0xbe   :  { %v472_v63 = vadd.f32 %v448_v62, %v220_v61  ;;  %v203_v0 = vpop.f32.mrf.mxu0 }
  0xbf   :  { %v431_v1 = vpop.f32.mrf.mxu1 }
  0xc0   :  { %v492_v2 = vadd.f32 %v823_v33, %v472_v63  ;;  %v465_v3 = vadd.f32 %v431_v1, %v203_v0 }
  0xc2   :  { %508 = vst [vmem:[%s894_s5 + $0x58] sm:$0xff] %v492_v2  ;;  %v485_v4 = vadd.f32 %v823_v33, %v465_v3 }
  0xc4   :  { %501 = vst [vmem:[%s894_s5 + $0x20] sm:$0xff] %v485_v4  ;;  %v223_v5 = vpop.f32.mrf.mxu2 }
  0xc5   :  { %v451_v6 = vpop.f32.mrf.mxu3 }
  0xc6   :  { %v473_v7 = vadd.f32 %v451_v6, %v223_v5  ;;  %v205_v8 = vpop.f32.mrf.mxu0 }
  0xc7   :  { %v433_v9 = vpop.f32.mrf.mxu1 }
  0xc8   :  { %v493_v10 = vadd.f32 %v823_v33, %v473_v7  ;;  %v466_v11 = vadd.f32 %v433_v9, %v205_v8 }
  0xca   :  { %509 = vst [vmem:[%s894_s5 + $0x60] sm:$0xff] %v493_v10  ;;  %v486_v12 = vadd.f32 %v823_v33, %v466_v11 }
  0xcc   :  { %502 = vst [vmem:[%s894_s5 + $0x28] sm:$0xff] %v486_v12  ;;  %v225_v13 = vpop.f32.mrf.mxu2 }
  0xcd   :  { %v453_v14 = vpop.f32.mrf.mxu3 }
  0xce   :  { %v474_v15 = vadd.f32 %v453_v14, %v225_v13  ;;  %v208_v16 = vpop.f32.mrf.mxu0 }
  0xcf   :  { %v436_v17 = vpop.f32.mrf.mxu1 }
  0xd0   :  { %v494_v18 = vadd.f32 %v823_v33, %v474_v15  ;;  %v467_v19 = vadd.f32 %v436_v17, %v208_v16 }
  0xd2   :  { %510 = vst [vmem:[%s894_s5 + $0x68] sm:$0xff] %v494_v18  ;;  %v487_v20 = vadd.f32 %v823_v33, %v467_v19 }
  0xd4   :  { %503 = vst [vmem:[%s894_s5 + $0x30] sm:$0xff] %v487_v20  ;;  %v228_v21 = vpop.f32.mrf.mxu2 }
  0xd5   :  { %v456_v22 = vpop.f32.mrf.mxu3 }
  0xd6   :  { %v475_v23 = vadd.f32 %v456_v22, %v228_v21  ;;  %v210_v24 = vpop.f32.mrf.mxu0 }
  0xd7   :  { %v438_v25 = vpop.f32.mrf.mxu1 }
  0xd8   :  { %v495_v26 = vadd.f32 %v823_v33, %v475_v23  ;;  %v468_v27 = vadd.f32 %v438_v25, %v210_v24 }
  0xda   :  { %511 = vst [vmem:[%s894_s5 + $0x70] sm:$0xff] %v495_v26  ;;  %v488_v28 = vadd.f32 %v823_v33, %v468_v27 }
  0xdc   :  { %504 = vst [vmem:[%s894_s5 + $0x38] sm:$0xff] %v488_v28  ;;  %v230_v29 = vpop.f32.mrf.mxu2 }
  0xdd   :  { %v458_v30 = vpop.f32.mrf.mxu3 }
  0xde   :  { %v476_v31 = vadd.f32 %v458_v30, %v230_v29 }
  0xe0   :  { %v496_v32 = vadd.f32 %v823_v33, %v476_v31 }
  0xe2   :  { %512 = vst [vmem:[%s894_s5 + $0x78] sm:$0xff] %v496_v32 }

// kernel: gnn_encoder_forward.2
= control target key start
LH: loop header
LB: loop body
LE: loop exit
PB: predicated region body
PF: predicated region fallthrough
CT: control target
= control target key end

     0   :  { %s1484_s1 = inlined_call_operand.vmem [shape: bf16[128,128], index: 1, kind: input, shape index: {}, may-alias: {1,2}]   ;;  %s1485_s0 = inlined_call_operand.vmem [shape: bf16[128,128], index: 0, kind: input, shape index: {}]   ;;  %s1486_s3 = inlined_call_operand.vmem [shape: bf16[256,128], index: 3, kind: input, shape index: {}]   ;;  %s1487_s2 = inlined_call_operand.vmem [shape: bf16[128,128], index: 2, kind: input, shape index: {}, may-alias: {1,2}]   ;;  %s1488_s4 = inlined_call_operand.vmem [shape: f32[1,128], index: 4, kind: input, shape index: {}]   ;;  %s1489_s5 = inlined_call_operand.vmem [shape: bf16[128,128], index: 5, kind: input, shape index: {}]   ;;  %s1490_s6 = inlined_call_operand.vmem [shape: bf16[128,128], index: 6, kind: output, shape index: {0}]   ;;  %s1491_s7 = inlined_call_operand.vmem [shape: bf16[128,128], index: 7, kind: output, shape index: {1}]  }
   0x1   :  { %v1103_v0 = vld [vmem:[%s1484_s1 + $0x38] sm:$0xff]  ;;  %v1102_v1 = vld [vmem:[%s1484_s1 + $0x30] sm:$0xff]  ;;  %v1101_v2 = vld [vmem:[%s1484_s1 + $0x28] sm:$0xff] }
   0x2   :  { %189 = vmatpush.bf16.msra.mxu0 %v1103_v0  ;;  %v1100_v3 = vld [vmem:[%s1484_s1 + $0x20] sm:$0xff]  ;;  %v1099_v4 = vld [vmem:[%s1484_s1 + $0x18] sm:$0xff]  ;;  %v1098_v5 = vld [vmem:[%s1484_s1 + $0x10] sm:$0xff] }
   0x3   :  { %v1097_v6 = vld [vmem:[%s1484_s1 + $0x8] sm:$0xff]  ;;  %v1096_v7 = vld [vmem:[%s1484_s1] sm:$0xff]  ;;  %v1090_v10 = vld [vmem:[%s1485_s0 + $0x10] sm:$0xff] }
   0x4   :  { %v1088_v8 = vld [vmem:[%s1485_s0] sm:$0xff]  ;;  %v1089_v9 = vld [vmem:[%s1485_s0 + $0x8] sm:$0xff]  ;;  %v1091_v11 = vld [vmem:[%s1485_s0 + $0x18] sm:$0xff] }
   0x5   :  { %v1092_v12 = vld [vmem:[%s1485_s0 + $0x20] sm:$0xff]  ;;  %v1127_v13 = vld [vmem:[%s1486_s3 + $0x78] sm:$0xff]  ;;  %v1126_v15 = vld [vmem:[%s1486_s3 + $0x70] sm:$0xff] }
   0x6   :  { %190 = vmatpush.bf16.msra.mxu0 %v1102_v1  ;;  %v1119_v14 = vld [vmem:[%s1486_s3 + $0x38] sm:$0xff]  ;;  %598 = vmatpush.bf16.msra.mxu2 %v1127_v13  ;;  %v1125_v16 = vld [vmem:[%s1486_s3 + $0x68] sm:$0xff]  ;;  %v1124_v17 = vld [vmem:[%s1486_s3 + $0x60] sm:$0xff] }
   0x7   :  { %549 = vmatpush.bf16.msra.mxu1 %v1119_v14  ;;  %v1093_v18 = vld [vmem:[%s1485_s0 + $0x28] sm:$0xff]  ;;  %v1118_v19 = vld [vmem:[%s1486_s3 + $0x30] sm:$0xff]  ;;  %v1123_v20 = vld [vmem:[%s1486_s3 + $0x58] sm:$0xff] }
   0x8   :  { %v1117_v21 = vld [vmem:[%s1486_s3 + $0x28] sm:$0xff]  ;;  %v1122_v22 = vld [vmem:[%s1486_s3 + $0x50] sm:$0xff]  ;;  %v1116_v23 = vld [vmem:[%s1486_s3 + $0x20] sm:$0xff] }
   0x9   :  { %v1121_v24 = vld [vmem:[%s1486_s3 + $0x48] sm:$0xff]  ;;  %v1115_v25 = vld [vmem:[%s1486_s3 + $0x18] sm:$0xff]  ;;  %v1120_v26 = vld [vmem:[%s1486_s3 + $0x40] sm:$0xff] }
   0xa   :  { %191 = vmatpush.bf16.msra.mxu0 %v1101_v2  ;;  %599 = vmatpush.bf16.msra.mxu2 %v1126_v15  ;;  %v1094_v27 = vld [vmem:[%s1485_s0 + $0x30] sm:$0xff]  ;;  %v1104_v28 = vld [vmem:[%s1487_s2] sm:$0xff]  ;;  %v1113_v30 = vld [vmem:[%s1486_s3 + $0x8] sm:$0xff] }
   0xb   :  { %550 = vmatpush.bf16.msra.mxu1 %v1118_v19  ;;  %v1114_v29 = vld [vmem:[%s1486_s3 + $0x10] sm:$0xff]  ;;  %v1112_v31 = vld [vmem:[%s1486_s3] sm:$0xff]  ;;  %v1095_v32 = vld [vmem:[%s1485_s0 + $0x38] sm:$0xff] }
   0xc   :  { %v1105_v33 = vld [vmem:[%s1487_s2 + $0x8] sm:$0xff]  ;;  %v1106_v35 = vld [vmem:[%s1487_s2 + $0x10] sm:$0xff]  ;;  %v1107_v43 = vld [vmem:[%s1487_s2 + $0x18] sm:$0xff] }
   0xd   :  { %v1108_v51 = vld [vmem:[%s1487_s2 + $0x20] sm:$0xff]  ;;  %v1109_v59 = vld [vmem:[%s1487_s2 + $0x28] sm:$0xff] }
   0xe   :  { %192 = vmatpush.bf16.msra.mxu0 %v1100_v3  ;;  %600 = vmatpush.bf16.msra.mxu2 %v1125_v16  ;;  %v1110_v3 = vld [vmem:[%s1487_s2 + $0x30] sm:$0xff] }
   0xf   :  { %551 = vmatpush.bf16.msra.mxu1 %v1117_v21  ;;  %v1133_v21 = vld [vmem:[%s1489_s5 + $0x28] sm:$0xff] }
  0x12   :  { %193 = vmatpush.bf16.msra.mxu0 %v1099_v4  ;;  %601 = vmatpush.bf16.msra.mxu2 %v1124_v17 }
  0x13   :  { %552 = vmatpush.bf16.msra.mxu1 %v1116_v23 }
  0x16   :  { %194 = vmatpush.bf16.msra.mxu0 %v1098_v5  ;;  %602 = vmatpush.bf16.msra.mxu2 %v1123_v20  ;;  %v1134_v20 = vld [vmem:[%s1489_s5 + $0x30] sm:$0xff] }
  0x17   :  { %553 = vmatpush.bf16.msra.mxu1 %v1115_v25 }
  0x1a   :  { %195 = vmatpush.bf16.msra.mxu0 %v1097_v6  ;;  %603 = vmatpush.bf16.msra.mxu2 %v1122_v22 }
  0x1b   :  { %554 = vmatpush.bf16.msra.mxu1 %v1114_v29 }
  0x1e   :  { %196 = vmatpush.bf16.msra.mxu0 %v1096_v7  ;;  %604 = vmatpush.bf16.msra.mxu2 %v1121_v24 }
  0x1f   :  { %555 = vmatpush.bf16.msra.mxu1 %v1113_v30 }
  0x21   :  { %197 = vmatmul.bf16.vlgmr.msra.gmra.mxu0 %v1088_v8 }
  0x22   :  { %605 = vmatpush.bf16.msra.mxu2 %v1120_v26 }
  0x23   :  { %556 = vmatpush.bf16.msra.mxu1 %v1112_v31  ;;  %v1131_v31 = vld [vmem:[%s1489_s5 + $0x18] sm:$0xff] }
  0x25   :  { %606 = vmatmul.bf16.vlgmr.msra.gmra.mxu2 %v1104_v28 }
  0x31   :  { %202 = vmatmul.bf16.gmra.mxu0 %v1089_v9 }
  0x35   :  { %611 = vmatmul.bf16.gmra.mxu2 %v1105_v33 }
  0x41   :  { %207 = vmatmul.bf16.gmra.mxu0 %v1090_v10 }
  0x45   :  { %616 = vmatmul.bf16.gmra.mxu2 %v1106_v35  ;;  %v1129_v35 = vld [vmem:[%s1489_s5 + $0x8] sm:$0xff] }
  0x51   :  { %212 = vmatmul.bf16.gmra.mxu0 %v1091_v11  ;;  %v1111_v11 = vld [vmem:[%s1487_s2 + $0x38] sm:$0xff] }
  0x55   :  { %621 = vmatmul.bf16.gmra.mxu2 %v1107_v43  ;;  %v1418_v43 = vld [vmem:[%s1488_s4] ss:$0 sm:$0xff] }
  0x61   :  { %217 = vmatmul.bf16.gmra.mxu0 %v1092_v12 }
  0x65   :  { %626 = vmatmul.bf16.gmra.mxu2 %v1108_v51 }
  0x71   :  { %222 = vmatmul.bf16.gmra.mxu0 %v1093_v18  ;;  %v1135_v18 = vld [vmem:[%s1489_s5 + $0x38] sm:$0xff] }
  0x72   :  { %807 = vmatpush.bf16.msra.mxu3 %v1135_v18 }
  0x75   :  { %631 = vmatmul.bf16.gmra.mxu2 %v1109_v59 }
  0x76   :  { %808 = vmatpush.bf16.msra.mxu3 %v1134_v20 }
  0x7a   :  { %809 = vmatpush.bf16.msra.mxu3 %v1133_v21 }
  0x81   :  { %227 = vmatmul.bf16.gmra.mxu0 %v1094_v27  ;;  %v1132_v27 = vld [vmem:[%s1489_s5 + $0x20] sm:$0xff] }
  0x82   :  { %810 = vmatpush.bf16.msra.mxu3 %v1132_v27 }
  0x85   :  { %636 = vmatmul.bf16.gmra.mxu2 %v1110_v3 }
  0x86   :  { %811 = vmatpush.bf16.msra.mxu3 %v1131_v31 }
  0x91   :  { %232 = vmatmul.bf16.gmra.mxu0 %v1095_v32  ;;  %v1130_v32 = vld [vmem:[%s1489_s5 + $0x10] sm:$0xff] }
  0x92   :  { %812 = vmatpush.bf16.msra.mxu3 %v1130_v32 }
  0x95   :  { %641 = vmatmul.bf16.gmra.mxu2 %v1111_v11 }
  0x96   :  { %813 = vmatpush.bf16.msra.mxu3 %v1129_v35 }
  0x9e   :  { %v198_v34 = vpop.f32.mrf.mxu0 }
  0x9f   :  { %v305_v36 = vpack.c.bf16 %v198_v34, %v198_v34 }
  0xa1   :  { %v337_v39 = vunpack.c.l.b16 %v305_v36 }
  0xa6   :  { %v200_v37 = vpop.f32.mrf.mxu0 }
  0xa7   :  { %v306_v38 = vpack.c.bf16 %v200_v37, %v200_v37 }
  0xa8   :  { %v607_v30 = vpop.f32.mrf.mxu2 }
  0xa9   :  { %v338_v40 = vunpack.c.l.b16 %v306_v38 }
  0xab   :  { %v353_v41 = vpack.c.b16 %v338_v40, %v337_v39  ;;  %v1128_v40 = vld [vmem:[%s1489_s5] sm:$0xff] }
  0xac   :  { %814 = vmatpush.bf16.msra.mxu3 %v1128_v40 }
  0xad   :  { %557 = vmatmul.bf16.vlgmr.msra.gmra.mxu1 %v353_v41 }
  0xae   :  { %v203_v42 = vpop.f32.mrf.mxu0 }
  0xaf   :  { %v307_v44 = vpack.c.bf16 %v203_v42, %v203_v42 }
  0xb0   :  { %v609_v37 = vpop.f32.mrf.mxu2 }
  0xb1   :  { %v339_v47 = vunpack.c.l.b16 %v307_v44 }
  0xb6   :  { %v205_v45 = vpop.f32.mrf.mxu0 }
  0xb7   :  { %v308_v46 = vpack.c.bf16 %v205_v45, %v205_v45 }
  0xb8   :  { %v612_v42 = vpop.f32.mrf.mxu2 }
  0xb9   :  { %v340_v48 = vunpack.c.l.b16 %v308_v46 }
  0xbb   :  { %v354_v49 = vpack.c.b16 %v340_v48, %v339_v47 }
  0xbd   :  { %562 = vmatmul.bf16.gmra.mxu1 %v354_v49 }
  0xbe   :  { %v208_v50 = vpop.f32.mrf.mxu0 }
  0xbf   :  { %v309_v52 = vpack.c.bf16 %v208_v50, %v208_v50 }
  0xc0   :  { %v614_v46 = vpop.f32.mrf.mxu2 }
  0xc1   :  { %v341_v55 = vunpack.c.l.b16 %v309_v52 }
  0xc6   :  { %v210_v53 = vpop.f32.mrf.mxu0 }
  0xc7   :  { %v310_v54 = vpack.c.bf16 %v210_v53, %v210_v53 }
  0xc8   :  { %v617_v52 = vpop.f32.mrf.mxu2 }
  0xc9   :  { %v342_v56 = vunpack.c.l.b16 %v310_v54 }
  0xcb   :  { %v355_v57 = vpack.c.b16 %v342_v56, %v341_v55 }
  0xcd   :  { %567 = vmatmul.bf16.gmra.mxu1 %v355_v57 }
  0xce   :  { %v213_v58 = vpop.f32.mrf.mxu0 }
  0xcf   :  { %v311_v60 = vpack.c.bf16 %v213_v58, %v213_v58 }
  0xd1   :  { %v343_v63 = vunpack.c.l.b16 %v311_v60 }
  0xd6   :  { %v215_v61 = vpop.f32.mrf.mxu0 }
  0xd7   :  { %v312_v62 = vpack.c.bf16 %v215_v61, %v215_v61 }
  0xd9   :  { %v344_v0 = vunpack.c.l.b16 %v312_v62 }
  0xdb   :  { %v356_v1 = vpack.c.b16 %v344_v0, %v343_v63  ;;  %v619_v63 = vpop.f32.mrf.mxu2 }
  0xdd   :  { %572 = vmatmul.bf16.gmra.mxu1 %v356_v1 }
  0xde   :  { %v218_v2 = vpop.f32.mrf.mxu0 }
  0xdf   :  { %v313_v4 = vpack.c.bf16 %v218_v2, %v218_v2 }
  0xe1   :  { %v345_v7 = vunpack.c.l.b16 %v313_v4 }
  0xe6   :  { %v220_v5 = vpop.f32.mrf.mxu0 }
  0xe7   :  { %v314_v6 = vpack.c.bf16 %v220_v5, %v220_v5 }
  0xe9   :  { %v346_v8 = vunpack.c.l.b16 %v314_v6 }
  0xeb   :  { %v357_v9 = vpack.c.b16 %v346_v8, %v345_v7 }
  0xed   :  { %577 = vmatmul.bf16.gmra.mxu1 %v357_v9  ;;  %v622_v9 = vpop.f32.mrf.mxu2 }
  0xee   :  { %v223_v10 = vpop.f32.mrf.mxu0 }
  0xef   :  { %v315_v12 = vpack.c.bf16 %v223_v10, %v223_v10 }
  0xf1   :  { %v347_v15 = vunpack.c.l.b16 %v315_v12 }
  0xf5   :  { %v624_v18 = vpop.f32.mrf.mxu2 }
  0xf6   :  { %v225_v13 = vpop.f32.mrf.mxu0 }
  0xf7   :  { %v316_v14 = vpack.c.bf16 %v225_v13, %v225_v13 }
  0xf9   :  { %v348_v16 = vunpack.c.l.b16 %v316_v14 }
  0xfb   :  { %v358_v17 = vpack.c.b16 %v348_v16, %v347_v15 }
  0xfd   :  { %582 = vmatmul.bf16.gmra.mxu1 %v358_v17 }
  0xfe   :  { %v228_v19 = vpop.f32.mrf.mxu0 }
  0xff   :  { %v317_v22 = vpack.c.bf16 %v228_v19, %v228_v19 }
 0x101   :  { %v349_v25 = vunpack.c.l.b16 %v317_v22 }
 0x106   :  { %v230_v23 = vpop.f32.mrf.mxu0 }
 0x107   :  { %v318_v24 = vpack.c.bf16 %v230_v23, %v230_v23 }
 0x109   :  { %v350_v26 = vunpack.c.l.b16 %v318_v24 }
 0x10b   :  { %v359_v28 = vpack.c.b16 %v350_v26, %v349_v25 }
 0x10d   :  { %587 = vmatmul.bf16.gmra.mxu1 %v359_v28 }
 0x10e   :  { %v233_v29 = vpop.f32.mrf.mxu0 }
 0x10f   :  { %v319_v33 = vpack.c.bf16 %v233_v29, %v233_v29  ;;  %v627_v29 = vpop.f32.mrf.mxu2 }
 0x111   :  { %v351_v38 = vunpack.c.l.b16 %v319_v33 }
 0x116   :  { %v235_v34 = vpop.f32.mrf.mxu0 }
 0x117   :  { %v320_v36 = vpack.c.bf16 %v235_v34, %v235_v34 }
 0x119   :  { %v352_v39 = vunpack.c.l.b16 %v320_v36 }
 0x11b   :  { %v360_v41 = vpack.c.b16 %v352_v39, %v351_v38 }
 0x11d   :  { %592 = vmatmul.bf16.gmra.mxu1 %v360_v41 }
 0x12a   :  { %v558_v44 = vpop.f32.mrf.mxu1 }
 0x12b   :  { %v559_v45 = vadd.f32 %v1418_v43, %v558_v44 }
 0x12d   :  { %v608_v47 = vadd.f32 %v607_v30, %v559_v45 }
 0x12f   :  { %v647_v49 = vmax.f32 %v608_v47, 0.0 }
 0x131   :  { %v663_v54 = vpack.c.bf16 %v647_v49, %v647_v49 }
 0x132   :  { %v560_v48 = vpop.f32.mrf.mxu1 }
 0x133   :  { %v561_v50 = vadd.f32 %v1418_v43, %v560_v48  ;;  %v727_v59 = vunpack.c.l.b16 %v663_v54 }
 0x135   :  { %v610_v51 = vadd.f32 %v609_v37, %v561_v50  ;;  %v629_v37 = vpop.f32.mrf.mxu2 }
 0x137   :  { %v648_v53 = vmax.f32 %v610_v51, 0.0 }
 0x139   :  { %v1139_v55 = vpack.c.bf16 %v648_v53, %v647_v49  ;;  %v664_v56 = vpack.c.bf16 %v648_v53, %v648_v53 }
 0x13a   :  { %v563_v57 = vpop.f32.mrf.mxu1 }
 0x13b   :  { %1140 = vst [vmem:[%s1490_s6] sm:$0xff] %v1139_v55   ;;  %v564_v58 = vadd.f32 %v1418_v43, %v563_v57  ;;  %v728_v60 = vunpack.c.l.b16 %v664_v56 }
 0x13d   :  { %v743_v61 = vpack.c.b16 %v728_v60, %v727_v59  ;;  %v613_v62 = vadd.f32 %v612_v42, %v564_v58  ;;  %v632_v48 = vpop.f32.mrf.mxu2 }
 0x13f   :  { %815 = vmatmul.bf16.vlgmr.msra.gmra.mxu3 %v743_v61  ;;  %v649_v1 = vmax.f32 %v613_v62, 0.0 }
 0x141   :  { %v665_v5 = vpack.c.bf16 %v649_v1, %v649_v1 }
 0x142   :  { %v565_v0 = vpop.f32.mrf.mxu1 }
 0x143   :  { %v566_v2 = vadd.f32 %v1418_v43, %v565_v0  ;;  %v729_v11 = vunpack.c.l.b16 %v665_v5 }
 0x145   :  { %v615_v3 = vadd.f32 %v614_v46, %v566_v2  ;;  %v634_v60 = vpop.f32.mrf.mxu2 }
 0x147   :  { %v650_v4 = vmax.f32 %v615_v3, 0.0 }
 0x149   :  { %v1144_v6 = vpack.c.bf16 %v650_v4, %v649_v1  ;;  %v666_v7 = vpack.c.bf16 %v650_v4, %v650_v4 }
 0x14a   :  { %v568_v8 = vpop.f32.mrf.mxu1 }
 0x14b   :  { %1216 = vst [vmem:[%s1490_s6 + $0x8] sm:$0xff] %v1144_v6   ;;  %v569_v10 = vadd.f32 %v1418_v43, %v568_v8  ;;  %v730_v12 = vunpack.c.l.b16 %v666_v7 }
 0x14d   :  { %v744_v13 = vpack.c.b16 %v730_v12, %v729_v11  ;;  %v618_v14 = vadd.f32 %v617_v52, %v569_v10  ;;  %v637_v3 = vpop.f32.mrf.mxu2 }
 0x14f   :  { %820 = vmatmul.bf16.gmra.mxu3 %v744_v13  ;;  %v651_v16 = vmax.f32 %v618_v14, 0.0 }
 0x151   :  { %v667_v21 = vpack.c.bf16 %v651_v16, %v651_v16 }
 0x152   :  { %v570_v15 = vpop.f32.mrf.mxu1 }
 0x153   :  { %v571_v17 = vadd.f32 %v1418_v43, %v570_v15  ;;  %v731_v26 = vunpack.c.l.b16 %v667_v21 }
 0x155   :  { %v620_v19 = vadd.f32 %v619_v63, %v571_v17  ;;  %v639_v14 = vpop.f32.mrf.mxu2 }
 0x157   :  { %v652_v20 = vmax.f32 %v620_v19, 0.0 }
 0x159   :  { %v1149_v22 = vpack.c.bf16 %v652_v20, %v651_v16  ;;  %v668_v23 = vpack.c.bf16 %v652_v20, %v652_v20 }
 0x15a   :  { %v573_v24 = vpop.f32.mrf.mxu1 }
 0x15b   :  { %1217 = vst [vmem:[%s1490_s6 + $0x10] sm:$0xff] %v1149_v22   ;;  %v574_v25 = vadd.f32 %v1418_v43, %v573_v24  ;;  %v732_v27 = vunpack.c.l.b16 %v668_v23 }
 0x15d   :  { %v745_v28 = vpack.c.b16 %v732_v27, %v731_v26  ;;  %v623_v30 = vadd.f32 %v622_v9, %v574_v25  ;;  %v642_v23 = vpop.f32.mrf.mxu2 }
 0x15f   :  { %825 = vmatmul.bf16.gmra.mxu3 %v745_v28  ;;  %v653_v32 = vmax.f32 %v623_v30, 0.0 }
 0x161   :  { %v669_v36 = vpack.c.bf16 %v653_v32, %v653_v32 }
 0x162   :  { %v575_v31 = vpop.f32.mrf.mxu1 }
 0x163   :  { %v576_v33 = vadd.f32 %v1418_v43, %v575_v31  ;;  %v733_v42 = vunpack.c.l.b16 %v669_v36 }
 0x165   :  { %v625_v34 = vadd.f32 %v624_v18, %v576_v33  ;;  %v644_v33 = vpop.f32.mrf.mxu2 }
 0x167   :  { %v654_v35 = vmax.f32 %v625_v34, 0.0 }
 0x169   :  { %v1154_v38 = vpack.c.bf16 %v654_v35, %v653_v32  ;;  %v670_v39 = vpack.c.bf16 %v654_v35, %v654_v35 }
 0x16a   :  { %v578_v40 = vpop.f32.mrf.mxu1 }
 0x16b   :  { %1218 = vst [vmem:[%s1490_s6 + $0x18] sm:$0xff] %v1154_v38   ;;  %v579_v41 = vadd.f32 %v1418_v43, %v578_v40  ;;  %v734_v44 = vunpack.c.l.b16 %v670_v39 }
 0x16d   :  { %v746_v45 = vpack.c.b16 %v734_v44, %v733_v42  ;;  %v628_v46 = vadd.f32 %v627_v29, %v579_v41 }
 0x16f   :  { %830 = vmatmul.bf16.gmra.mxu3 %v746_v45  ;;  %v655_v49 = vmax.f32 %v628_v46, 0.0 }
 0x171   :  { %v671_v53 = vpack.c.bf16 %v655_v49, %v655_v49 }
 0x172   :  { %v580_v47 = vpop.f32.mrf.mxu1 }
 0x173   :  { %v581_v50 = vadd.f32 %v1418_v43, %v580_v47  ;;  %v735_v58 = vunpack.c.l.b16 %v671_v53 }
 0x175   :  { %v630_v51 = vadd.f32 %v629_v37, %v581_v50 }
 0x177   :  { %v656_v52 = vmax.f32 %v630_v51, 0.0 }
 0x179   :  { %v1159_v54 = vpack.c.bf16 %v656_v52, %v655_v49  ;;  %v672_v55 = vpack.c.bf16 %v656_v52, %v656_v52 }
 0x17a   :  { %v583_v56 = vpop.f32.mrf.mxu1 }
 0x17b   :  { %1219 = vst [vmem:[%s1490_s6 + $0x20] sm:$0xff] %v1159_v54   ;;  %v584_v57 = vadd.f32 %v1418_v43, %v583_v56  ;;  %v736_v59 = vunpack.c.l.b16 %v672_v55 }
 0x17d   :  { %v747_v61 = vpack.c.b16 %v736_v59, %v735_v58  ;;  %v633_v62 = vadd.f32 %v632_v48, %v584_v57 }
 0x17f   :  { %835 = vmatmul.bf16.gmra.mxu3 %v747_v61  ;;  %v657_v0 = vmax.f32 %v633_v62, 0.0 }
 0x181   :  { %v673_v5 = vpack.c.bf16 %v657_v0, %v657_v0 }
 0x182   :  { %v585_v63 = vpop.f32.mrf.mxu1 }
 0x183   :  { %v586_v1 = vadd.f32 %v1418_v43, %v585_v63  ;;  %v737_v10 = vunpack.c.l.b16 %v673_v5 }
 0x185   :  { %v635_v2 = vadd.f32 %v634_v60, %v586_v1 }
 0x187   :  { %v658_v4 = vmax.f32 %v635_v2, 0.0 }
 0x189   :  { %v1164_v6 = vpack.c.bf16 %v658_v4, %v657_v0  ;;  %v674_v7 = vpack.c.bf16 %v658_v4, %v658_v4 }
 0x18a   :  { %v588_v8 = vpop.f32.mrf.mxu1 }
 0x18b   :  { %1220 = vst [vmem:[%s1490_s6 + $0x28] sm:$0xff] %v1164_v6   ;;  %v589_v9 = vadd.f32 %v1418_v43, %v588_v8  ;;  %v738_v11 = vunpack.c.l.b16 %v674_v7 }
 0x18d   :  { %v748_v12 = vpack.c.b16 %v738_v11, %v737_v10  ;;  %v638_v13 = vadd.f32 %v637_v3, %v589_v9 }
 0x18f   :  { %840 = vmatmul.bf16.gmra.mxu3 %v748_v12  ;;  %v659_v16 = vmax.f32 %v638_v13, 0.0 }
 0x191   :  { %v675_v20 = vpack.c.bf16 %v659_v16, %v659_v16 }
 0x192   :  { %v590_v15 = vpop.f32.mrf.mxu1 }
 0x193   :  { %v591_v17 = vadd.f32 %v1418_v43, %v590_v15  ;;  %v739_v26 = vunpack.c.l.b16 %v675_v20 }
 0x195   :  { %v640_v18 = vadd.f32 %v639_v14, %v591_v17 }
 0x197   :  { %v660_v19 = vmax.f32 %v640_v18, 0.0 }
 0x199   :  { %v1169_v21 = vpack.c.bf16 %v660_v19, %v659_v16  ;;  %v676_v22 = vpack.c.bf16 %v660_v19, %v660_v19 }
 0x19a   :  { %v593_v24 = vpop.f32.mrf.mxu1 }
 0x19b   :  { %1221 = vst [vmem:[%s1490_s6 + $0x30] sm:$0xff] %v1169_v21   ;;  %v594_v25 = vadd.f32 %v1418_v43, %v593_v24  ;;  %v740_v27 = vunpack.c.l.b16 %v676_v22 }
 0x19d   :  { %v749_v28 = vpack.c.b16 %v740_v27, %v739_v26  ;;  %v643_v29 = vadd.f32 %v642_v23, %v594_v25 }
 0x19f   :  { %845 = vmatmul.bf16.gmra.mxu3 %v749_v28  ;;  %v661_v31 = vmax.f32 %v643_v29, 0.0 }
 0x1a1   :  { %v677_v36 = vpack.c.bf16 %v661_v31, %v661_v31 }
 0x1a2   :  { %v595_v30 = vpop.f32.mrf.mxu1 }
 0x1a3   :  { %v596_v32 = vadd.f32 %v1418_v43, %v595_v30  ;;  %v741_v39 = vunpack.c.l.b16 %v677_v36 }
 0x1a5   :  { %v645_v34 = vadd.f32 %v644_v33, %v596_v32 }
 0x1a7   :  { %v662_v35 = vmax.f32 %v645_v34, 0.0 }
 0x1a9   :  { %v1174_v37 = vpack.c.bf16 %v662_v35, %v661_v31  ;;  %v678_v38 = vpack.c.bf16 %v662_v35, %v662_v35 }
 0x1ab   :  { %1222 = vst [vmem:[%s1490_s6 + $0x38] sm:$0xff] %v1174_v37   ;;  %v742_v40 = vunpack.c.l.b16 %v678_v38 }
 0x1ad   :  { %v750_v41 = vpack.c.b16 %v742_v40, %v741_v39 }
 0x1af   :  { %850 = vmatmul.bf16.gmra.mxu3 %v750_v41 }
 0x1c2   :  { %v816_v42 = vpop.f32.mrf.mxu3 }
 0x1ca   :  { %v818_v44 = vpop.f32.mrf.mxu3 }
 0x1cb   :  { %v1179_v45 = vpack.c.bf16 %v818_v44, %v816_v42 }
 0x1cd   :  { %1180 = vst [vmem:[%s1491_s7] sm:$0xff] %v1179_v45  }
 0x1d2   :  { %v821_v43 = vpop.f32.mrf.mxu3 }
 0x1da   :  { %v823_v46 = vpop.f32.mrf.mxu3 }
 0x1db   :  { %v1184_v47 = vpack.c.bf16 %v823_v46, %v821_v43 }
 0x1dd   :  { %1223 = vst [vmem:[%s1491_s7 + $0x8] sm:$0xff] %v1184_v47  }
 0x1e2   :  { %v826_v48 = vpop.f32.mrf.mxu3 }
 0x1ea   :  { %v828_v49 = vpop.f32.mrf.mxu3 }
 0x1eb   :  { %v1189_v50 = vpack.c.bf16 %v828_v49, %v826_v48 }
 0x1ed   :  { %1224 = vst [vmem:[%s1491_s7 + $0x10] sm:$0xff] %v1189_v50  }
 0x1f2   :  { %v831_v51 = vpop.f32.mrf.mxu3 }
 0x1fa   :  { %v833_v52 = vpop.f32.mrf.mxu3 }
 0x1fb   :  { %v1194_v53 = vpack.c.bf16 %v833_v52, %v831_v51 }
 0x1fd   :  { %1225 = vst [vmem:[%s1491_s7 + $0x18] sm:$0xff] %v1194_v53  }
 0x202   :  { %v836_v54 = vpop.f32.mrf.mxu3 }
 0x20a   :  { %v838_v55 = vpop.f32.mrf.mxu3 }
 0x20b   :  { %v1199_v56 = vpack.c.bf16 %v838_v55, %v836_v54 }
 0x20d   :  { %1226 = vst [vmem:[%s1491_s7 + $0x20] sm:$0xff] %v1199_v56  }
 0x212   :  { %v841_v57 = vpop.f32.mrf.mxu3 }
 0x21a   :  { %v843_v58 = vpop.f32.mrf.mxu3 }
 0x21b   :  { %v1204_v59 = vpack.c.bf16 %v843_v58, %v841_v57 }
 0x21d   :  { %1227 = vst [vmem:[%s1491_s7 + $0x28] sm:$0xff] %v1204_v59  }
 0x222   :  { %v846_v60 = vpop.f32.mrf.mxu3 }
 0x22a   :  { %v848_v61 = vpop.f32.mrf.mxu3 }
 0x22b   :  { %v1209_v62 = vpack.c.bf16 %v848_v61, %v846_v60 }
 0x22d   :  { %1228 = vst [vmem:[%s1491_s7 + $0x30] sm:$0xff] %v1209_v62  }
 0x232   :  { %v851_v63 = vpop.f32.mrf.mxu3 }
 0x23a   :  { %v853_v0 = vpop.f32.mrf.mxu3 }
 0x23b   :  { %v1214_v1 = vpack.c.bf16 %v853_v0, %v851_v63 }
 0x23d   :  { %1229 = vst [vmem:[%s1491_s7 + $0x38] sm:$0xff] %v1214_v1  }

</bundles_post_ra>
